<compile_context>
chip_gen: v6e
topology: v6e:2x2x1
jax: 0.10.0
libtpu: 0.0.40
codegen_flags: <defaults>
</compile_context>

<pallas_src>
import math

import jax
import jax.numpy as jnp
from jax.experimental import pallas as pl
from jax.experimental.pallas import tpu as pltpu


_TARGET_TILE_BYTES = 4 * 1024 * 1024  # ~4 MiB of x per tile


def _make_pe_table(d_model: int, max_len: int) -> jnp.ndarray:
    """Deterministic sinusoidal table, shape (max_len, d_model), float32."""
    position = jnp.arange(0, max_len, dtype=jnp.float32)[:, None]            # (L, 1)
    div_term = jnp.exp(
        jnp.arange(0, d_model, 2, dtype=jnp.float32) * (-math.log(10000.0) / d_model)
    )                                                                         # (ceil(D/2),)
    angles = position * div_term                                              # (L, ceil(D/2))
    pe = jnp.zeros((max_len, d_model), dtype=jnp.float32)
    pe = pe.at[:, 0::2].set(jnp.sin(angles))
    pe = pe.at[:, 1::2].set(jnp.cos(angles)[:, : d_model // 2])               # robust for odd D
    return pe


def _make_pe_add_kernel(nb: int):
    """Kernel over (ts, nb*D) x/out tiles and a narrow (ts, D) pe tile.

    The batch broadcast (lane replication of pe by `nb`) happens in-kernel on
    the small pe tile; it rides in VPU/XLU slack well under the DMA time.
    """
    def kernel(x_ref, pe_ref, o_ref):
        pe = pe_ref[...]
        if nb > 1:
            pe = jnp.tile(pe, (1, nb))
        o_ref[...] = x_ref[...] + pe
    return kernel


def _choose_tiles(seq_len, batch, d_model, dtype, seq_tile=None, batch_tile=None):
    """Pick (seq rows per tile, batch entries per lane tile)."""
    itemsize = jnp.dtype(dtype).itemsize
    row_align = max(8, 32 // itemsize)  # sublane packing: 8 f32, 16 bf16, 32 int8

    # --- batch entries per lane tile (nb) ---
    if batch_tile is not None:
        nb = int(min(batch, max(1, batch_tile)))
    else:
        per_entry = row_align * d_model * itemsize
        nb = int(min(batch, max(1, _TARGET_TILE_BYTES // max(1, per_entry))))
    if nb < batch:
        # Lane tile width nb*d_model must be a multiple of 128.
        g = 128 // math.gcd(d_model, 128)
        nb = (nb // g) * g
        if nb == 0:
            # TODO(synk): pathological huge d_model with tiny batch would also
            # need d-axis tiling; fall back to the always-legal full lane extent.
            nb = batch
    tl = nb * d_model

    # --- seq rows per tile ---
    if seq_tile is not None:
        ts = int(seq_tile)
    else:
        ts = _TARGET_TILE_BYTES // max(1, tl * itemsize)
    ts = min(max(1, ts), seq_len)
    if ts < seq_len:
        ts = max(row_align, (ts // row_align) * row_align)
        ts = min(ts, seq_len)

    # Keep >= 2 grid steps when possible so v7x's two TensorCores both get work.
    n_lane = -(-batch // nb)
    if ts >= seq_len and n_lane < 2 and seq_len > row_align:
        half = (seq_len + 1) // 2
        ts = min(seq_len, max(row_align, -(-half // row_align) * row_align))

    return ts, nb


class PositionalEncoding:
    """JAX/Pallas port of the PyTorch PositionalEncoding module."""

    def __init__(self, d_model: int, max_len: int):
        self.d_model = d_model
        self.max_len = max_len
        # Equivalent of the registered buffer `pe` of shape (max_len, 1, d_model);
        # stored as (max_len, d_model) and broadcast over batch inside the kernel.
        self.pe = _make_pe_table(d_model, max_len)
        self._pe_cache = {jnp.dtype(jnp.float32): self.pe}  # per-dtype cast cache

    def _pe_for(self, dtype) -> jnp.ndarray:
        dt = jnp.dtype(dtype)
        if dt not in self._pe_cache:
            self._pe_cache[dt] = self.pe.astype(dt)
        return self._pe_cache[dt]

    def __call__(self, x: jnp.ndarray, seq_tile=None, batch_tile=None) -> jnp.ndarray:
        # x: (seq_len, batch, d_model)
        seq_len, batch, d_model = x.shape
        assert d_model == self.d_model
        assert seq_len <= self.max_len

        itemsize = jnp.dtype(x.dtype).itemsize
        ts, nb = _choose_tiles(seq_len, batch, d_model, x.dtype, seq_tile, batch_tile)
        tl = nb * d_model

        # Lane-dense 2-D view: fold batch into the lane axis (free under jit).
        x2 = x.reshape(seq_len, batch * d_model)
        # Narrow pe table (max_len, d_model), already in x.dtype; BlockSpec only
        # pulls the first ceil(seq_len/ts) row-blocks of it.
        pe = self._pe_for(x.dtype)

        grid = (pl.cdiv(seq_len, ts), pl.cdiv(batch, nb))

        cost = pl.CostEstimate(
            flops=seq_len * batch * d_model,
            transcendentals=0,
            bytes_accessed=(2 * seq_len * batch * d_model + seq_len * d_model) * itemsize,
        )

        out2 = pl.pallas_call(
            _make_pe_add_kernel(nb),
            out_shape=jax.ShapeDtypeStruct((seq_len, batch * d_model), x.dtype),
            grid=grid,
            in_specs=[
                pl.BlockSpec((ts, tl), lambda i, j: (i, j)),        # x tile
                pl.BlockSpec((ts, d_model), lambda i, j: (i, 0)),   # narrow pe tile
            ],
            out_specs=pl.BlockSpec((ts, tl), lambda i, j: (i, j)),
            compiler_params=pltpu.CompilerParams(
                dimension_semantics=("parallel", "parallel"),
                vmem_limit_bytes=32 * 1024 * 1024,
            ),
            cost_estimate=cost,
        )(x2, pe)
        return out2.reshape(seq_len, batch, d_model)


if __name__ == "__main__":
    key0, key1, key2 = jax.random.split(jax.random.PRNGKey(0), 3)

    # Case 1: small shapes implied by the forward: x is (seq, batch, d_model).
    seq_len, batch, d_model, max_len = 8, 2, 32, 16
    x = jax.random.normal(key0, (seq_len, batch, d_model), dtype=jnp.float32)
    module = PositionalEncoding(d_model=d_model, max_len=max_len)
    ref = x + module.pe[:seq_len][:, None, :]
    y = jax.block_until_ready(module(x))
    assert y.shape == x.shape and y.dtype == x.dtype
    assert jnp.allclose(y, ref, atol=1e-6, rtol=1e-6)

    # Case 2: multi-tile pipelined grid along seq (4 seq tiles of 16 rows).
    seq_len2, batch2, d_model2, max_len2 = 64, 2, 32, 64
    x2 = jax.random.normal(key1, (seq_len2, batch2, d_model2), dtype=jnp.float32)
    module2 = PositionalEncoding(d_model=d_model2, max_len=max_len2)
    ref2 = x2 + module2.pe[:seq_len2][:, None, :]
    y2 = jax.block_until_ready(module2(x2, seq_tile=16))
    assert jnp.allclose(y2, ref2, atol=1e-6, rtol=1e-6)

    # Case 3: exercise the 2-D grid with lane-axis (batch) tiling and the
    # in-kernel pe replication (nb=2 of batch=4).
    seq_len3, batch3, d_model3, max_len3 = 32, 4, 256, 32
    x3 = jax.random.normal(key2, (seq_len3, batch3, d_model3), dtype=jnp.float32)
    module3 = PositionalEncoding(d_model=d_model3, max_len=max_len3)
    ref3 = x3 + module3.pe[:seq_len3][:, None, :]
    y3 = jax.block_until_ready(module3(x3, seq_tile=16, batch_tile=2))
    assert jnp.allclose(y3, ref3, atol=1e-6, rtol=1e-6)

    print("KERNEL_OK")
</pallas_src>

<mosaic_0001>
module attributes {stable_mosaic.version = 11 : i64} {
  func.func @kernel(%arg0: i32, %arg1: i32, %arg2: memref<8x64xf32, #tpu.memory_space<vmem>>, %arg3: memref<8x32xf32, #tpu.memory_space<vmem>>, %arg4: memref<8x64xf32, #tpu.memory_space<vmem>>) attributes {dimension_semantics = [#tpu.dimension_semantics<parallel>, #tpu.dimension_semantics<parallel>], iteration_bounds = array<i64: 1, 1>, scalar_prefetch = 0 : i64, scratch_operands = 0 : i64, tpu.core_type = #tpu.core_type<tc>, window_params = [{transform_indices = @transform_0, window_bounds = array<i64: 8, 64>}, {transform_indices = @transform_1, window_bounds = array<i64: 8, 32>}, {transform_indices = @transform_2, window_bounds = array<i64: 8, 64>}]} {
    %c0 = arith.constant 0 : index
    %c0_0 = arith.constant 0 : index
    %0 = vector.load %arg3[%c0, %c0_0] : memref<8x32xf32, #tpu.memory_space<vmem>>, vector<8x32xf32>
    %1 = tpu.concatenate %0, %0 in 1 : vector<8x32xf32>, vector<8x32xf32> -> vector<8x64xf32>
    %c0_1 = arith.constant 0 : index
    %c0_2 = arith.constant 0 : index
    %2 = vector.load %arg2[%c0_1, %c0_2] : memref<8x64xf32, #tpu.memory_space<vmem>>, vector<8x64xf32>
    %3 = arith.addf %2, %1 : vector<8x64xf32>
    %c0_3 = arith.constant 0 : index
    %c0_4 = arith.constant 0 : index
    %4 = vector.load %arg4[%c0_3, %c0_4] : memref<8x64xf32, #tpu.memory_space<vmem>>, vector<8x64xf32>
    tpu.vector_store %arg4[%c0_3, %c0_4], %3 {strides = array<i32>} : memref<8x64xf32, #tpu.memory_space<vmem>>, vector<8x64xf32>,
    return
  }
  func.func @transform_0(%arg0: i32, %arg1: i32) -> (i32, i32) {
    %c0_i32 = arith.constant 0 : i32
    return %arg0, %arg1 : i32, i32
  }
  func.func @transform_1(%arg0: i32, %arg1: i32) -> (i32, i32) {
    %c0_i32 = arith.constant 0 : i32
    %c0_i32_0 = arith.constant 0 : i32
    return %arg0, %c0_i32 : i32, i32
  }
  func.func @transform_2(%arg0: i32, %arg1: i32) -> (i32, i32) {
    %c0_i32 = arith.constant 0 : i32
    return %arg0, %arg1 : i32, i32
  }
}

</mosaic_0001>

<bundles_post_ra>
// kernel: tpu_custom_call.1
= control target key start
LH: loop header
LB: loop body
LE: loop exit
PB: predicated region body
PF: predicated region fallthrough
CT: control target
= control target key end

     0   :  { %7 = vsyncpa [#allocation3], 0  ;;  %s161_s0 = inlined_call_operand.hbm [shape: f32[8,64], index: 0, kind: input, shape index: {}]   ;;  %s162_s1 = inlined_call_operand.hbm [shape: f32[16,32], index: 1, kind: input, shape index: {}]   ;;  %s163_s2 = inlined_call_operand.hbm [shape: f32[8,64], index: 2, kind: output, shape index: {}]  }
   0x1   :  { %8 = vsyncpa [#allocation6], 0 }
   0x2   :  { %9 = vsyncpa [#allocation4], 0  ;;  %s133_s9 = smov [#allocation2]   ;;  %s134_s11 = smov [#allocation5]  }
   0x3   :  { %s16_s10 = sshll.u32 %s133_s9, 4  ;;  %s26_s12 = sshll.u32 %s134_s11, 4  ;;  %s17_s10 = int_to_ptr.vmem [resolvable:$true] %s16_s10  ;;  %s27_s12 = int_to_ptr.vmem [resolvable:$true] %s26_s12 }
   0x4   :  { %s75_s13 = scalar_lea.vmem %s17_s10, 128  ;;  %p80_p1 = scmp.lt.s32.totalorder %s17_s10, %s17_s10 }
   0x5   :  { %p76_p0 = scmp.ne.s32.totalorder %s17_s10, %s75_s13  ;;  %p81_p2 = scmp.lt.s32.totalorder %s75_s13, %s75_s13 }
   0x7   :  { %p82_p3 = por %p81_p2, %p80_p1 }
   0x9   :  { %p83_p4 = pnand %p82_p3, %p76_p0 }
   0xb   :  { %86 = shalt.err (!%p83_p4)
}
   0xc   :  { %19 = dma.hbm_to_vmem [thread:$0]  %s161_s0, 128, %s17_s10, [#allocation3]  }
   0xd   :  { %s95_s16 = scalar_lea.vmem %s27_s12, 128  ;;  %p100_p6 = scmp.lt.s32.totalorder %s27_s12, %s27_s12 }
   0xe   :  { %p96_p5 = scmp.ne.s32.totalorder %s27_s12, %s95_s16  ;;  %p101_p7 = scmp.lt.s32.totalorder %s95_s16, %s95_s16 }
  0x10   :  { %p102_p8 = por %p101_p7, %p100_p6 }
  0x12   :  { %p103_p9 = pnand %p102_p8, %p96_p5 }
  0x14   :  { %106 = shalt.err (!%p103_p9)
}
  0x15   :  { %29 = dma.hbm_to_vmem [thread:$0]  %s162_s1, 128, %s27_s12, [#allocation6]  }
  0x16   :  { %127 = dma.done.wait [#allocation3], 128  }
  0x17   :  { %128 = vsyncadd [#allocation3], 4294967168 }
  0x18   :  { %129 = dma.done.wait [#allocation6], 128  }
  0x19   :  { %130 = vsyncadd [#allocation6], 4294967168  ;;  %v36_v0 = vld [vmem:[#allocation5] sm:$0xff]  ;;  %s135_s19 = smov 32   ;;  %vm41_vm0 = vcmask 261120   ;;  %v43_v1 = vld [vmem:[#allocation2] sm:$0xff] }
  0x1a   :  { %38 = vrot.lane.b32.xlu0 %v36_v0, %s135_s19  ;;  %s136_s0 = smov [#allocation7]   ;;  %vm45_vm1 = vcmask 523264  }
  0x1b   :  { %s53_s20 = sshll.u32 %s136_s0, 4  ;;  %s54_s20 = int_to_ptr.vmem [resolvable:$true] %s53_s20 }
  0x1c   :  { %s107_s21 = scalar_lea.vmem %s54_s20, 128  ;;  %p112_p11 = scmp.lt.s32.totalorder %s54_s20, %s54_s20 }
  0x1d   :  { %p108_p10 = scmp.ne.s32.totalorder %s54_s20, %s107_s21  ;;  %p113_p12 = scmp.lt.s32.totalorder %s107_s21, %s107_s21 }
  0x1f   :  { %p114_p13 = por %p113_p12, %p112_p11 }
  0x21   :  { %p115_p0 = pnand %p114_p13, %p108_p10 }
  0x8c   :  { %v39_v2 = vpop.permute.xlu0 %38 }
  0x8d   :  { %v42_v3 = vsel %vm41_vm0, %v36_v0, %v39_v2 }
  0x8e   :  { %v44_v4 = vadd.f32 %v43_v1, %v42_v3 }
  0x90   :  { %46 = vst.msk [vmem:[#allocation7] sm:$0xff] %vm45_vm1, %v44_v4 }
  0x91   :  { %118 = shalt.err (!%p115_p0)
}
  0x92   :  { %56 = dma.vmem_to_hbm [thread:$0]  %s54_s20, 128, %s163_s2, [#allocation4]  }
  0x93   :  { %131 = dma.done.wait [#allocation4], 128  }
  0x94   :  { %132 = vsyncadd [#allocation4], 4294967168 }
  0x95   :  { %60 = vsyncpa [#allocation3], 1 }
  0x96   :  { %61 = vsyncpa [#allocation6], 1 }
  0x97   :  { %62 = vsyncpa [#allocation4], 1 }

</bundles_post_ra>
